<compile_context>
chip_gen: v5e
topology: v5e:2x2
jax: 0.10.0
libtpu: 0.0.40
codegen_flags: <defaults>
</compile_context>

<pallas_src>
import functools
import math

import jax
import jax.numpy as jnp
from jax.experimental import pallas as pl
from jax.experimental.pallas import tpu as pltpu


def _round_up(n, m):
    return (n + m - 1) // m * m


def _attention_kernel(x_ref, mask_ref, w_ref, b_ref, o_ref, *, hp, h):
    # x_ref:    (Bt, S, E)   activations, already in the MXU dtype (bf16 by default)
    # mask_ref: (Bt, 1, S)   0/1 floats (f32)
    # w_ref:    (E, 3*Hp)    fused, lane-padded, scale-folded [Wq*s | Wk | Wv], MXU dtype
    # b_ref:    (1, 3*Hp)    fused bias, f32 (bq already scaled)
    # o_ref:    (Bt, S, H)   direct (unpadded) output
    bt, s, e = x_ref.shape
    mxu_dtype = w_ref.dtype

    x = x_ref[...].reshape(bt * s, e)  # S is a multiple of 8 -> free sublane relayout

    # One fused QKV matmul on the MXU, f32 accumulation, f32 bias add.
    qkv = jnp.dot(x, w_ref[...], preferred_element_type=jnp.float32) + b_ref[...]

    # Lane-tile-aligned static slices (hp is a multiple of 128).  The 1/sqrt(H) scale is
    # already folded into the Wq/bq columns, so q needs no further scaling.
    q = qkv[:, 0:hp].reshape(bt, s, hp)
    k = qkv[:, hp:2 * hp].reshape(bt, s, hp)
    v = qkv[:, 2 * hp:3 * hp].reshape(bt, s, hp)

    # Attention logits: contract the head axis of both operands directly (no k transpose).
    scores = jnp.einsum("bqh,bkh->bqk", q.astype(mxu_dtype), k.astype(mxu_dtype),
                        preferred_element_type=jnp.float32)

    # Additive mask bias: 0 where mask==1, -1e9 where mask==0 (broadcast over query rows).
    scores = scores + (mask_ref[...] - 1.0) * 1e9

    # Numerically-stable softmax along the key axis; EUP reciprocal frees the VALU slot.
    m = jnp.max(scores, axis=-1, keepdims=True)
    p = jnp.exp(scores - m)
    denom = jnp.sum(p, axis=-1, keepdims=True)
    attn = p * pl.reciprocal(denom, approx=True)

    out = jnp.einsum("bqk,bkh->bqh", attn.astype(mxu_dtype), v.astype(mxu_dtype),
                     preferred_element_type=jnp.float32)
    # Drop the zero pad lanes at the store: only H lanes per row are written back to HBM.
    o_ref[...] = out[:, :, :h].astype(o_ref.dtype)


def prepare_qkv_params(wq, bq, wk, bk, wv, bv, *, mxu_dtype=jnp.bfloat16):
    """One-time parameter transform: fuse, lane-pad, fold 1/sqrt(H), cast weights to MXU dtype.

    wq/wk/wv are the nn.Linear weights pre-transposed to (E, H); bq/bk/bv are (1, H) or (H,).
    Returns (w_qkv, b_qkv) with w_qkv (E, 3*Hp) in `mxu_dtype` and b_qkv (1, 3*Hp) in f32.
    """
    E, H = wq.shape
    Hp = _round_up(H, 128)
    scale = 1.0 / math.sqrt(H)

    w = jnp.zeros((E, 3 * Hp), jnp.float32)
    w = w.at[:, 0:H].set(wq * scale)                 # fold scale into Wq
    w = w.at[:, Hp:Hp + H].set(wk)
    w = w.at[:, 2 * Hp:2 * Hp + H].set(wv)

    b = jnp.zeros((1, 3 * Hp), jnp.float32)
    b = b.at[:, 0:H].set(bq.reshape(1, H) * scale)   # fold scale into bq
    b = b.at[:, Hp:Hp + H].set(bk.reshape(1, H))
    b = b.at[:, 2 * Hp:2 * Hp + H].set(bv.reshape(1, H))

    return w.astype(mxu_dtype), b                    # bias stays f32 (added post-accumulation)


_VMEM_SELECT_BUDGET = 20 * 1024 * 1024   # per-step working-set budget used to pick block_b
_VMEM_LIMIT_CAP = 48 * 1024 * 1024       # stay safely under v7x's 64 MiB physical VMEM


def _vmem_bytes_estimate(bb, s, e, hp, h, w_bytes):
    """Rough per-step VMEM working-set estimate (pipeline double-buffers in/out blocks)."""
    rows = bb * s
    x_blk = rows * e * w_bytes
    out_blk = rows * h * 4
    mask_blk = bb * s * 4
    w = e * 3 * hp * w_bytes
    bias = 3 * hp * 4
    qkv = rows * 3 * hp * 4              # f32 accumulation
    qkv_cast = rows * 3 * hp * w_bytes   # bf16 copies of q/k/v for the 2nd/3rd matmuls
    scores = bb * s * s * 4 * 3          # scores / p / attn in f32
    out_tmp = rows * hp * 4
    return (2 * (x_blk + out_blk + mask_blk) + 2 * (w + bias)
            + qkv + qkv_cast + scores + out_tmp)


def _choose_block_b(B, s, e, hp, h, w_bytes):
    # Largest divisor of B that fits the VMEM budget, capped at B//2 so the batch grid keeps
    # >= 2 "parallel" steps (lets v7x shard across both TensorCores; no cost on v5e/v6e).
    max_bb = max(1, B // 2) if B >= 2 else 1
    for bb in range(max_bb, 0, -1):
        if B % bb != 0:
            continue
        if _vmem_bytes_estimate(bb, s, e, hp, h, w_bytes) <= _VMEM_SELECT_BUDGET:
            return bb
    return 1


def masked_self_attention(x, mask, w_qkv, b_qkv, head_dim, *, block_b=None):
    """x: (B, S, E) f32; mask: (B, S) of {0,1}; (w_qkv, b_qkv) from prepare_qkv_params."""
    B, S, E = x.shape
    H = head_dim
    Hp = w_qkv.shape[1] // 3
    assert Hp % 128 == 0 and H <= Hp

    # Pad the sequence to a multiple of 8 sublanes so the in-kernel reshapes are free.
    Sp = _round_up(S, 8)
    if Sp != S:
        x = jnp.pad(x, ((0, 0), (0, Sp - S), (0, 0)))
        mask = jnp.pad(mask, ((0, 0), (0, Sp - S)))   # padded keys are masked out
    mask3 = mask.reshape(B, 1, Sp).astype(jnp.float32)
    x = x.astype(w_qkv.dtype)                         # cast activations once, in the wrapper

    w_bytes = jnp.dtype(w_qkv.dtype).itemsize
    if block_b is None:
        block_b = _choose_block_b(B, Sp, E, Hp, H, w_bytes)
    assert B % block_b == 0, "block_b must divide the batch size"

    est = _vmem_bytes_estimate(block_b, Sp, E, Hp, H, w_bytes)
    vmem_limit = int(min(_VMEM_LIMIT_CAP, max(2 * est, 16 * 1024 * 1024)))

    kernel = functools.partial(_attention_kernel, hp=Hp, h=H)

    def call(single_buffer_weights):
        const_kwargs = (dict(pipeline_mode=pl.Buffered(1)) if single_buffer_weights else {})
        return pl.pallas_call(
            kernel,
            out_shape=jax.ShapeDtypeStruct((B, Sp, H), jnp.float32),
            grid=(B // block_b,),
            in_specs=[
                pl.BlockSpec((block_b, Sp, E), lambda b: (b, 0, 0)),            # x
                pl.BlockSpec((block_b, 1, Sp), lambda b: (b, 0, 0)),            # mask (B,1,S)
                pl.BlockSpec((E, 3 * Hp), lambda b: (0, 0), **const_kwargs),    # fused W_qkv
                pl.BlockSpec((1, 3 * Hp), lambda b: (0, 0), **const_kwargs),    # fused b_qkv
            ],
            out_specs=pl.BlockSpec((block_b, Sp, H), lambda b: (b, 0, 0)),
            compiler_params=pltpu.CompilerParams(
                dimension_semantics=("parallel",),
                vmem_limit_bytes=vmem_limit),
        )(x, mask3, w_qkv, b_qkv)

    try:
        # Grid-invariant weight/bias blocks: request single buffering (saves one weight copy of
        # VMEM; Pallas already skips re-copying constant-index blocks).
        out = jax.block_until_ready(call(True))
    except Exception:
        # pipeline_mode=pl.Buffered not supported on this jax build -> default double buffering.
        out = jax.block_until_ready(call(False))

    return out[:, :S, :] if Sp != S else out


def reference(x, mask, wq, bq, wk, bk, wv, bv):
    """Plain-JAX reference mirroring the PyTorch forward."""
    q = x @ wq + bq
    k = x @ wk + bk
    v = x @ wv + bv
    scores = jnp.einsum("bsh,bth->bst", q, k) / math.sqrt(wq.shape[1])
    scores = jnp.where(mask[:, None, :] == 0.0, -1e9, scores)
    attn = jax.nn.softmax(scores, axis=-1)
    return jnp.einsum("bst,bth->bsh", attn, v)


if __name__ == "__main__":
    B, S, E, H = 2, 8, 32, 16

    key = jax.random.PRNGKey(0)
    kx, km, k1, k2, k3, k4, k5, k6 = jax.random.split(key, 8)

    x = jax.random.normal(kx, (B, S, E), dtype=jnp.float32)
    # 0/1 mask (ensure at least one unmasked token per row).
    mask = (jax.random.uniform(km, (B, S)) > 0.3).astype(jnp.float32)
    mask = mask.at[:, 0].set(1.0)

    # nn.Linear(E, H) parameters, stored pre-transposed as (E, H) for the kernel.
    bound = 1.0 / math.sqrt(E)
    wq = jax.random.uniform(k1, (E, H), minval=-bound, maxval=bound, dtype=jnp.float32)
    wk = jax.random.uniform(k2, (E, H), minval=-bound, maxval=bound, dtype=jnp.float32)
    wv = jax.random.uniform(k3, (E, H), minval=-bound, maxval=bound, dtype=jnp.float32)
    bq = jax.random.uniform(k4, (1, H), minval=-bound, maxval=bound, dtype=jnp.float32)
    bk = jax.random.uniform(k5, (1, H), minval=-bound, maxval=bound, dtype=jnp.float32)
    bv = jax.random.uniform(k6, (1, H), minval=-bound, maxval=bound, dtype=jnp.float32)

    ref = reference(x, mask, wq, bq, wk, bk, wv, bv)

    # Fast default: bf16 MXU operands with f32 accumulation (loose check covers bf16 rounding).
    w_bf16, b_fused = prepare_qkv_params(wq, bq, wk, bk, wv, bv, mxu_dtype=jnp.bfloat16)
    out_bf16 = jax.block_until_ready(masked_self_attention(x, mask, w_bf16, b_fused, H))
    assert out_bf16.shape == (B, S, H)
    assert jnp.allclose(out_bf16, ref, atol=5e-2, rtol=5e-2), \
        f"bf16 path: max abs err = {jnp.max(jnp.abs(out_bf16 - ref))}"

    # Training-grade check: f32 MXU operands (tolerance covers the approximate EUP reciprocal).
    w_f32, b_fused32 = prepare_qkv_params(wq, bq, wk, bk, wv, bv, mxu_dtype=jnp.float32)
    out_f32 = jax.block_until_ready(masked_self_attention(x, mask, w_f32, b_fused32, H))
    assert out_f32.shape == (B, S, H)
    assert jnp.allclose(out_f32, ref, atol=5e-3, rtol=5e-3), \
        f"f32 path: max abs err = {jnp.max(jnp.abs(out_f32 - ref))}"

    print("KERNEL_OK")
</pallas_src>

<mosaic_0001>
module attributes {stable_mosaic.version = 11 : i64} {
  func.func @_attention_kernel(%arg0: i32, %arg1: memref<1x8x32xbf16, #tpu.memory_space<vmem>>, %arg2: memref<1x1x8xf32, #tpu.memory_space<vmem>>, %arg3: memref<32x384xbf16, #tpu.memory_space<vmem>>, %arg4: memref<1x384xf32, #tpu.memory_space<vmem>>, %arg5: memref<1x8x16xf32, #tpu.memory_space<vmem>>) attributes {dimension_semantics = [#tpu.dimension_semantics<parallel>], iteration_bounds = array<i64: 2>, scalar_prefetch = 0 : i64, scratch_operands = 0 : i64, tpu.core_type = #tpu.core_type<tc>, window_params = [{transform_indices = @transform_0, window_bounds = array<i64: 1, 8, 32>}, {transform_indices = @transform_1, window_bounds = array<i64: 1, 1, 8>}, {pipeline_mode = #tpu.pipeline_mode<synchronous>, transform_indices = @transform_2, window_bounds = array<i64: 32, 384>}, {pipeline_mode = #tpu.pipeline_mode<synchronous>, transform_indices = @transform_3, window_bounds = array<i64: 1, 384>}, {transform_indices = @transform_4, window_bounds = array<i64: 1, 8, 16>}]} {
    %c0 = arith.constant 0 : index
    %c0_0 = arith.constant 0 : index
    %c0_1 = arith.constant 0 : index
    %0 = vector.load %arg1[%c0, %c0_0, %c0_1] : memref<1x8x32xbf16, #tpu.memory_space<vmem>>, vector<1x8x32xbf16>
    %1 = vector.shape_cast %0 : vector<1x8x32xbf16> to vector<8x32xbf16>
    %c0_2 = arith.constant 0 : index
    %c0_3 = arith.constant 0 : index
    %2 = vector.load %arg3[%c0_2, %c0_3] : memref<32x384xbf16, #tpu.memory_space<vmem>>, vector<32x384xbf16>
    %cst = arith.constant dense<0.000000e+00> : vector<8x384xf32>
    %3 = tpu.matmul %1, %2, %cst {dimension_numbers = #tpu.dot_dimension_numbers<[1], [0], [0], [1], [0, 0, 1, 1], [], []>} : vector<8x32xbf16>, vector<32x384xbf16>, vector<8x384xf32> -> vector<8x384xf32>
    %c0_4 = arith.constant 0 : index
    %c0_5 = arith.constant 0 : index
    %4 = vector.load %arg4[%c0_4, %c0_5] : memref<1x384xf32, #tpu.memory_space<vmem>>, vector<1x384xf32>
    %5 = vector.broadcast %4 : vector<1x384xf32> to vector<8x384xf32>
    %6 = arith.addf %3, %5 : vector<8x384xf32>
    %7 = vector.extract_strided_slice %6 {offsets = [0, 0], sizes = [8, 128], strides = [1, 1]} : vector<8x384xf32> to vector<8x128xf32>
    %8 = vector.shape_cast %7 : vector<8x128xf32> to vector<1x8x128xf32>
    %9 = vector.extract_strided_slice %6 {offsets = [0, 128], sizes = [8, 128], strides = [1, 1]} : vector<8x384xf32> to vector<8x128xf32>
    %10 = vector.shape_cast %9 : vector<8x128xf32> to vector<1x8x128xf32>
    %11 = vector.extract_strided_slice %6 {offsets = [0, 256], sizes = [8, 128], strides = [1, 1]} : vector<8x384xf32> to vector<8x128xf32>
    %12 = vector.shape_cast %11 : vector<8x128xf32> to vector<1x8x128xf32>
    %13 = arith.truncf %8 : vector<1x8x128xf32> to vector<1x8x128xbf16>
    %14 = arith.truncf %10 : vector<1x8x128xf32> to vector<1x8x128xbf16>
    "tpu.trace_start"() <{level = 10 : i32, message = "bqh,bkh->bqk"}> : () -> ()
    %cst_6 = arith.constant dense<0.000000e+00> : vector<1x8x8xf32>
    %15 = tpu.matmul %13, %14, %cst_6 {dimension_numbers = #tpu.dot_dimension_numbers<[2], [2], [1], [1], [0, 0, 0, 1, 1, 1], [0], [0]>} : vector<1x8x128xbf16>, vector<1x8x128xbf16>, vector<1x8x8xf32> -> vector<1x8x8xf32>
    "tpu.trace_stop"() : () -> ()
    %c0_7 = arith.constant 0 : index
    %c0_8 = arith.constant 0 : index
    %c0_9 = arith.constant 0 : index
    %16 = vector.load %arg2[%c0_7, %c0_8, %c0_9] : memref<1x1x8xf32, #tpu.memory_space<vmem>>, vector<1x1x8xf32>
    %cst_10 = arith.constant 1.000000e+00 : f32
    %17 = vector.broadcast %cst_10 : f32 to vector<1x1x8xf32>
    %18 = arith.subf %16, %17 : vector<1x1x8xf32>
    %cst_11 = arith.constant 1.000000e+09 : f32
    %19 = vector.broadcast %cst_11 : f32 to vector<1x1x8xf32>
    %20 = arith.mulf %18, %19 : vector<1x1x8xf32>
    %21 = vector.broadcast %20 : vector<1x1x8xf32> to vector<1x8x8xf32>
    %22 = arith.addf %15, %21 : vector<1x8x8xf32>
    %cst_12 = arith.constant dense<0xFF800000> : vector<1x8xf32>
    %23 = vector.multi_reduction <maximumf>, %22, %cst_12 [2] : vector<1x8x8xf32> to vector<1x8xf32>
    %24 = vector.shape_cast %23 : vector<1x8xf32> to vector<1x8x1xf32>
    %25 = vector.broadcast %24 : vector<1x8x1xf32> to vector<1x8x8xf32>
    %26 = arith.subf %22, %25 : vector<1x8x8xf32>
    %27 = math.exp %26 : vector<1x8x8xf32>
    %cst_13 = arith.constant dense<0.000000e+00> : vector<1x8xf32>
    %28 = vector.multi_reduction <add>, %27, %cst_13 [2] : vector<1x8x8xf32> to vector<1x8xf32>
    %29 = vector.shape_cast %28 : vector<1x8xf32> to vector<1x8x1xf32>
    %30 = tpu.reciprocal %29 {approx = true} : vector<1x8x1xf32> -> vector<1x8x1xf32>
    %31 = vector.broadcast %30 : vector<1x8x1xf32> to vector<1x8x8xf32>
    %32 = arith.mulf %27, %31 : vector<1x8x8xf32>
    %33 = arith.truncf %32 : vector<1x8x8xf32> to vector<1x8x8xbf16>
    %34 = arith.truncf %12 : vector<1x8x128xf32> to vector<1x8x128xbf16>
    "tpu.trace_start"() <{level = 10 : i32, message = "bqk,bkh->bqh"}> : () -> ()
    %cst_14 = arith.constant dense<0.000000e+00> : vector<1x8x128xf32>
    %35 = tpu.matmul %33, %34, %cst_14 {dimension_numbers = #tpu.dot_dimension_numbers<[2], [1], [1], [2], [0, 0, 0, 1, 1, 2], [0], [0]>} : vector<1x8x8xbf16>, vector<1x8x128xbf16>, vector<1x8x128xf32> -> vector<1x8x128xf32>
    "tpu.trace_stop"() : () -> ()
    %36 = vector.extract_strided_slice %35 {offsets = [0, 0, 0], sizes = [1, 8, 16], strides = [1, 1, 1]} : vector<1x8x128xf32> to vector<1x8x16xf32>
    %c0_15 = arith.constant 0 : index
    %c0_16 = arith.constant 0 : index
    %c0_17 = arith.constant 0 : index
    %37 = vector.load %arg5[%c0_15, %c0_16, %c0_17] : memref<1x8x16xf32, #tpu.memory_space<vmem>>, vector<1x8x16xf32>
    tpu.vector_store %arg5[%c0_15, %c0_16, %c0_17], %36 {strides = array<i32>} : memref<1x8x16xf32, #tpu.memory_space<vmem>>, vector<1x8x16xf32>,
    return
  }
  func.func @transform_0(%arg0: i32) -> (i32, i32, i32) {
    %c0_i32 = arith.constant 0 : i32
    %c0_i32_0 = arith.constant 0 : i32
    %c0_i32_1 = arith.constant 0 : i32
    return %arg0, %c0_i32, %c0_i32_0 : i32, i32, i32
  }
  func.func @transform_1(%arg0: i32) -> (i32, i32, i32) {
    %c0_i32 = arith.constant 0 : i32
    %c0_i32_0 = arith.constant 0 : i32
    %c0_i32_1 = arith.constant 0 : i32
    return %arg0, %c0_i32, %c0_i32_0 : i32, i32, i32
  }
  func.func @transform_2(%arg0: i32) -> (i32, i32) {
    %c0_i32 = arith.constant 0 : i32
    %c0_i32_0 = arith.constant 0 : i32
    %c0_i32_1 = arith.constant 0 : i32
    return %c0_i32, %c0_i32_0 : i32, i32
  }
  func.func @transform_3(%arg0: i32) -> (i32, i32) {
    %c0_i32 = arith.constant 0 : i32
    %c0_i32_0 = arith.constant 0 : i32
    %c0_i32_1 = arith.constant 0 : i32
    return %c0_i32, %c0_i32_0 : i32, i32
  }
  func.func @transform_4(%arg0: i32) -> (i32, i32, i32) {
    %c0_i32 = arith.constant 0 : i32
    %c0_i32_0 = arith.constant 0 : i32
    %c0_i32_1 = arith.constant 0 : i32
    return %arg0, %c0_i32, %c0_i32_0 : i32, i32, i32
  }
}

module attributes {stable_mosaic.version = 11 : i64} {
  func.func @_attention_kernel(%arg0: i32, %arg1: memref<1x8x32xbf16, #tpu.memory_space<vmem>>, %arg2: memref<1x1x8xf32, #tpu.memory_space<vmem>>, %arg3: memref<32x384xbf16, #tpu.memory_space<vmem>>, %arg4: memref<1x384xf32, #tpu.memory_space<vmem>>, %arg5: memref<1x8x16xf32, #tpu.memory_space<vmem>>) attributes {dimension_semantics = [#tpu.dimension_semantics<parallel>], iteration_bounds = array<i64: 2>, scalar_prefetch = 0 : i64, scratch_operands = 0 : i64, tpu.core_type = #tpu.core_type<tc>, window_params = [{transform_indices = @transform_0, window_bounds = array<i64: 1, 8, 32>}, {transform_indices = @transform_1, window_bounds = array<i64: 1, 1, 8>}, {pipeline_mode = #tpu.pipeline_mode<synchronous>, transform_indices = @transform_2, window_bounds = array<i64: 32, 384>}, {pipeline_mode = #tpu.pipeline_mode<synchronous>, transform_indices = @transform_3, window_bounds = array<i64: 1, 384>}, {transform_indices = @transform_4, window_bounds = array<i64: 1, 8, 16>}]} {
    %c0 = arith.constant 0 : index
    %c0_0 = arith.constant 0 : index
    %c0_1 = arith.constant 0 : index
    %0 = vector.load %arg1[%c0, %c0_0, %c0_1] : memref<1x8x32xbf16, #tpu.memory_space<vmem>>, vector<1x8x32xbf16>
    %1 = vector.shape_cast %0 : vector<1x8x32xbf16> to vector<8x32xbf16>
    %c0_2 = arith.constant 0 : index
    %c0_3 = arith.constant 0 : index
    %2 = vector.load %arg3[%c0_2, %c0_3] : memref<32x384xbf16, #tpu.memory_space<vmem>>, vector<32x384xbf16>
    %cst = arith.constant dense<0.000000e+00> : vector<8x384xf32>
    %3 = tpu.matmul %1, %2, %cst {dimension_numbers = #tpu.dot_dimension_numbers<[1], [0], [0], [1], [0, 0, 1, 1], [], []>} : vector<8x32xbf16>, vector<32x384xbf16>, vector<8x384xf32> -> vector<8x384xf32>
    %c0_4 = arith.constant 0 : index
    %c0_5 = arith.constant 0 : index
    %4 = vector.load %arg4[%c0_4, %c0_5] : memref<1x384xf32, #tpu.memory_space<vmem>>, vector<1x384xf32>
    %5 = vector.broadcast %4 : vector<1x384xf32> to vector<8x384xf32>
    %6 = arith.addf %3, %5 : vector<8x384xf32>
    %7 = vector.extract_strided_slice %6 {offsets = [0, 0], sizes = [8, 128], strides = [1, 1]} : vector<8x384xf32> to vector<8x128xf32>
    %8 = vector.shape_cast %7 : vector<8x128xf32> to vector<1x8x128xf32>
    %9 = vector.extract_strided_slice %6 {offsets = [0, 128], sizes = [8, 128], strides = [1, 1]} : vector<8x384xf32> to vector<8x128xf32>
    %10 = vector.shape_cast %9 : vector<8x128xf32> to vector<1x8x128xf32>
    %11 = vector.extract_strided_slice %6 {offsets = [0, 256], sizes = [8, 128], strides = [1, 1]} : vector<8x384xf32> to vector<8x128xf32>
    %12 = vector.shape_cast %11 : vector<8x128xf32> to vector<1x8x128xf32>
    %13 = arith.truncf %8 : vector<1x8x128xf32> to vector<1x8x128xbf16>
    %14 = arith.truncf %10 : vector<1x8x128xf32> to vector<1x8x128xbf16>
    "tpu.trace_start"() <{level = 10 : i32, message = "bqh,bkh->bqk"}> : () -> ()
    %cst_6 = arith.constant dense<0.000000e+00> : vector<1x8x8xf32>
    %15 = tpu.matmul %13, %14, %cst_6 {dimension_numbers = #tpu.dot_dimension_numbers<[2], [2], [1], [1], [0, 0, 0, 1, 1, 1], [0], [0]>} : vector<1x8x128xbf16>, vector<1x8x128xbf16>, vector<1x8x8xf32> -> vector<1x8x8xf32>
    "tpu.trace_stop"() : () -> ()
    %c0_7 = arith.constant 0 : index
    %c0_8 = arith.constant 0 : index
    %c0_9 = arith.constant 0 : index
    %16 = vector.load %arg2[%c0_7, %c0_8, %c0_9] : memref<1x1x8xf32, #tpu.memory_space<vmem>>, vector<1x1x8xf32>
    %cst_10 = arith.constant 1.000000e+00 : f32
    %17 = vector.broadcast %cst_10 : f32 to vector<1x1x8xf32>
    %18 = arith.subf %16, %17 : vector<1x1x8xf32>
    %cst_11 = arith.constant 1.000000e+09 : f32
    %19 = vector.broadcast %cst_11 : f32 to vector<1x1x8xf32>
    %20 = arith.mulf %18, %19 : vector<1x1x8xf32>
    %21 = vector.broadcast %20 : vector<1x1x8xf32> to vector<1x8x8xf32>
    %22 = arith.addf %15, %21 : vector<1x8x8xf32>
    %cst_12 = arith.constant dense<0xFF800000> : vector<1x8xf32>
    %23 = vector.multi_reduction <maximumf>, %22, %cst_12 [2] : vector<1x8x8xf32> to vector<1x8xf32>
    %24 = vector.shape_cast %23 : vector<1x8xf32> to vector<1x8x1xf32>
    %25 = vector.broadcast %24 : vector<1x8x1xf32> to vector<1x8x8xf32>
    %26 = arith.subf %22, %25 : vector<1x8x8xf32>
    %27 = math.exp %26 : vector<1x8x8xf32>
    %cst_13 = arith.constant dense<0.000000e+00> : vector<1x8xf32>
    %28 = vector.multi_reduction <add>, %27, %cst_13 [2] : vector<1x8x8xf32> to vector<1x8xf32>
    %29 = vector.shape_cast %28 : vector<1x8xf32> to vector<1x8x1xf32>
    %30 = tpu.reciprocal %29 {approx = true} : vector<1x8x1xf32> -> vector<1x8x1xf32>
    %31 = vector.broadcast %30 : vector<1x8x1xf32> to vector<1x8x8xf32>
    %32 = arith.mulf %27, %31 : vector<1x8x8xf32>
    %33 = arith.truncf %32 : vector<1x8x8xf32> to vector<1x8x8xbf16>
    %34 = arith.truncf %12 : vector<1x8x128xf32> to vector<1x8x128xbf16>
    "tpu.trace_start"() <{level = 10 : i32, message = "bqk,bkh->bqh"}> : () -> ()
    %cst_14 = arith.constant dense<0.000000e+00> : vector<1x8x128xf32>
    %35 = tpu.matmul %33, %34, %cst_14 {dimension_numbers = #tpu.dot_dimension_numbers<[2], [1], [1], [2], [0, 0, 0, 1, 1, 2], [0], [0]>} : vector<1x8x8xbf16>, vector<1x8x128xbf16>, vector<1x8x128xf32> -> vector<1x8x128xf32>
    "tpu.trace_stop"() : () -> ()
    %36 = vector.extract_strided_slice %35 {offsets = [0, 0, 0], sizes = [1, 8, 16], strides = [1, 1, 1]} : vector<1x8x128xf32> to vector<1x8x16xf32>
    %c0_15 = arith.constant 0 : index
    %c0_16 = arith.constant 0 : index
    %c0_17 = arith.constant 0 : index
    %37 = vector.load %arg5[%c0_15, %c0_16, %c0_17] : memref<1x8x16xf32, #tpu.memory_space<vmem>>, vector<1x8x16xf32>
    tpu.vector_store %arg5[%c0_15, %c0_16, %c0_17], %36 {strides = array<i32>} : memref<1x8x16xf32, #tpu.memory_space<vmem>>, vector<1x8x16xf32>,
    return
  }
  func.func @transform_0(%arg0: i32) -> (i32, i32, i32) {
    %c0_i32 = arith.constant 0 : i32
    %c0_i32_0 = arith.constant 0 : i32
    %c0_i32_1 = arith.constant 0 : i32
    return %arg0, %c0_i32, %c0_i32_0 : i32, i32, i32
  }
  func.func @transform_1(%arg0: i32) -> (i32, i32, i32) {
    %c0_i32 = arith.constant 0 : i32
    %c0_i32_0 = arith.constant 0 : i32
    %c0_i32_1 = arith.constant 0 : i32
    return %arg0, %c0_i32, %c0_i32_0 : i32, i32, i32
  }
  func.func @transform_2(%arg0: i32) -> (i32, i32) {
    %c0_i32 = arith.constant 0 : i32
    %c0_i32_0 = arith.constant 0 : i32
    %c0_i32_1 = arith.constant 0 : i32
    return %c0_i32, %c0_i32_0 : i32, i32
  }
  func.func @transform_3(%arg0: i32) -> (i32, i32) {
    %c0_i32 = arith.constant 0 : i32
    %c0_i32_0 = arith.constant 0 : i32
    %c0_i32_1 = arith.constant 0 : i32
    return %c0_i32, %c0_i32_0 : i32, i32
  }
  func.func @transform_4(%arg0: i32) -> (i32, i32, i32) {
    %c0_i32 = arith.constant 0 : i32
    %c0_i32_0 = arith.constant 0 : i32
    %c0_i32_1 = arith.constant 0 : i32
    return %arg0, %c0_i32, %c0_i32_0 : i32, i32, i32
  }
}

</mosaic_0001>

<bundles_post_ra>
// kernel: tpu_custom_call.1
= control target key start
LH: loop header
LB: loop body
LE: loop exit
PB: predicated region body
PF: predicated region fallthrough
CT: control target
= control target key end

     0   :  { %s1101_s0 = inlined_call_operand.hbm [shape: bf16[2,8,32], index: 0, kind: input, shape index: {}]   ;;  %s1102_s1 = inlined_call_operand.hbm [shape: f32[2,1,8], index: 1, kind: input, shape index: {}]   ;;  %s1103_s2 = inlined_call_operand.hbm [shape: bf16[32,384], index: 2, kind: input, shape index: {}]   ;;  %s1104_s3 = inlined_call_operand.hbm [shape: f32[1,384], index: 3, kind: input, shape index: {}]   ;;  %s1105_s4 = inlined_call_operand.hbm [shape: f32[2,8,16], index: 4, kind: output, shape index: {}]  }
   0x1   :  { %1106 = sst [smem:[#allocation16_spill]] %s1103_s2 }
   0x2   :  { %1107 = sst [smem:[#allocation17_spill]] %s1104_s3 }
   0x3   :  { %9 = vsyncpa [#allocation3], 0 }
   0x4   :  { %11 = vsyncpa [#allocation3 + $0x1], 0 }
   0x5   :  { %12 = vsyncpa [#allocation6], 0 }
   0x6   :  { %14 = vsyncpa [#allocation6 + $0x1], 0 }
   0x7   :  { %15 = vsyncpa [#allocation9], 0 }
   0x8   :  { %16 = vsyncpa [#allocation4], 0 }
   0x9   :  { %18 = vsyncpa [#allocation4 + $0x1], 0  ;;  %s913_s15 = smov 0   ;;  %s915_s16 = smov 0  }
   0xa   :  { %s917_s17 = smov 0   ;;  %s919_s18 = smov 0  }
   0xb LB: > { %s1108_s2 = sld [smem:[#allocation16_spill]]  ;;  %s937_s22 = sadd.s32 4294967295, %s882_s18   ;;  %s882_s18 = sphi %s919_s18, %s1120_s18   ;;  %s878_s17 = sphi %s917_s17, %s1119_s17   ;;  %s874_s16 = sphi %s915_s16, %s1118_s16   ;;  %s870_s15 = sphi %s913_s15, %s1117_s15  }
   0xc   : > { %p556_p0 = scmp.ge.s32.totalorder %s882_s18, 1  ;;  %p45_p1 = scmp.eq.s32.totalorder %s937_s22, 0 }
   0xd   : > { %p149_p2 = scmp.lt.s32.totalorder %s882_s18, 3  ;;  %s884_s24 = smov [#allocation7]  }
   0xe   : > { %s162_s25 = sshll.u32 %s884_s24, 4  ;;  %s1110_s3 = sld [smem:[#allocation17_spill]]  ;;  %s163_s25 = int_to_ptr.vmem [resolvable:$true] %s162_s25 }
   0xf   : > { %p942_p3 = pnand %p556_p0, %p149_p2  ;;  %s885_s29 = smov [#allocation8]  }
  0x10   : > { %s177_s30 = sshll.u32 %s885_s29, 4  ;;  %s886_s5 = smov 192   ;;  %s178_s30 = int_to_ptr.vmem [resolvable:$true] %s177_s30 }
  0x11   : > { %s160_s21 = sshll.u32 %s1108_s2, 4  ;;  %p620_p4 = pneg %p942_p3  ;;  %s161_s21 = int_to_ptr.hbm [resolvable:$true] %s160_s21 }
  0x12   : > { %s887_s6 = smov 12   ;;  %s555_s7 = sadd.s32 4294967294, %s882_s18  }
  0x13   : > { %p621_p6 = pnand %p620_p4, %p45_p1  ;;  %s956_s8 = sadd.s32 1, %s882_s18  }
  0x14   : > { %s175_s28 = sshll.u32 %s1110_s3, 4  ;;  %s28_s9 = ssub.s32 %s882_s18, %s956_s8  ;;  %s176_s28 = int_to_ptr.hbm [resolvable:$true] %s175_s28 }
  0x15   : > { %623 = dma.hbm_to_vmem [thread:$0]  (!%p621_p6), %s161_s21, 768, %s163_s25, [#allocation6], %s886_s5, %s886_s5, %s887_s6  }
  0x16   : > { %626 = dma.hbm_to_vmem [thread:$0]  (!%p621_p6), %s176_s28, 48, %s178_s30, [#allocation9]  }
  0x17   : > { %s31_s10 = sadd.s32 1, %s878_s17  ;;  %p29_p7 = scmp.eq.s32.totalorder %s28_s9, 0 }
  0x18   : > { %p38_p8 = scmp.ne.s32.totalorder %s878_s17, %s874_s16  ;;  %p39_p9 = scmp.eq.s32.totalorder %s882_s18, 0 }
  0x19   : > { %p44_p10 = scmp.ne.s32.totalorder %s874_s16, %s870_s15  ;;  %p136_p13 = scmp.eq.s32.totalorder %s937_s22, 1 }
  0x1a   : > { %s967_s11 = scalar_select %p29_p7, %s878_s17, %s31_s10  }
  0x1b   : > { %p969_p11 = por %p39_p9, %p38_p8  ;;  %p975_p12 = por %p45_p1, %p44_p10 }
  0x1c   : > { %p142_p0 = scmp.eq.s32.totalorder %s555_s7, 1  ;;  %p640_p2 = scmp.lt.s32.totalorder %s882_s18, 2 }
  0x1d   : > { %s982_s14 = sand.u32 1, %s878_s17   ;;  %p984_p4 = por %p136_p13, %p38_p8 }
  0x1e   : > { %p988_p6 = por %p142_p0, %p44_p10  ;;  %s560_s21 = sshll.u32 %s982_s14, 2 }
  0x1f   : > { %s561_s24 = sshll.u32 %s882_s18, 2  ;;  %s192_s28 = scalar_lea.vmem [#allocation2], %s560_s21 }
  0x20   : > { %s196_s27 = scalar_lea.hbm %s1101_s0, %s561_s24  ;;  %s200_s29 = sshll.u32 %s192_s28, 4  ;;  %s201_s29 = int_to_ptr.vmem [resolvable:$true] %s200_s29 }
  0x21   : > { %s198_s30 = sshll.u32 %s196_s27, 4  ;;  %p999_p7 = pnand %p640_p2, %p969_p11  ;;  %s199_s30 = int_to_ptr.hbm [resolvable:$true] %s198_s30 }
  0x22   : > { %s207_s6 = sand.u32 1, %s882_s18   ;;  %s189_s7 = scalar_lea.sflag [#allocation3], %s982_s14 }
  0x23   : > { %s744_s9 = sshra.s32 %s199_s30, 4  ;;  %p748_p9 = pneg %p999_p7  ;;  %s745_s9 = int_to_ptr.hbm [resolvable:$true] %s744_s9 }
  0x24   : > { %s746_s10 = scalar_lea.hbm %s745_s9, 4  ;;  %s751_s24 = scalar_lea.hbm %s1101_s0, 8 }
  0x25   : > { %p747_p8 = scmp.ne.s32.totalorder %s745_s9, %s746_s10  ;;  %p752_p11 = scmp.lt.s32.totalorder %s745_s9, %s1101_s0 }
  0x26   : > { %p753_p0 = scmp.lt.s32.totalorder %s751_s24, %s746_s10 }
  0x27   : > { %p749_p10 = pnand %p748_p9, %p747_p8 }
  0x28   : > { %p754_p2 = por %p753_p0, %p752_p11 }
  0x29   : > { %p750_p13 = pneg %p749_p10 }
  0x2b   : > { %p755_p5 = pnand %p754_p2, %p750_p13 }
  0x2d   : > { %758 = shalt.err (!%p755_p5)
}
  0x2e   : > { %630 = dma.hbm_to_vmem [thread:$0]  (!%p999_p7), %s199_s30, 64, %s201_s29, %s189_s7  }
  0x2f   : > { %s213_s2 = scalar_lea.hbm %s1102_s1, %s882_s18  ;;  %s210_s21 = scalar_lea.vmem [#allocation5], %s982_s14 }
  0x30   : > { %s217_s12 = sshll.u32 %s210_s21, 4  ;;  %s215_s3 = sshll.u32 %s213_s2, 4  ;;  %s218_s12 = int_to_ptr.vmem [resolvable:$true] %s217_s12  ;;  %s216_s3 = int_to_ptr.hbm [resolvable:$true] %s215_s3 }
  0x31   : > { %s208_s9 = scalar_lea.sflag [#allocation6], %s207_s6  ;;  %s774_s10 = sshra.s32 %s216_s3, 4  ;;  %s775_s10 = int_to_ptr.hbm [resolvable:$true] %s774_s10 }
  0x32   : > { %s776_s24 = scalar_lea.hbm %s775_s10, 1  ;;  %s781_s30 = scalar_lea.hbm %s1102_s1, 2 }
  0x33   : > { %p777_p5 = scmp.ne.s32.totalorder %s775_s10, %s776_s24  ;;  %p782_p13 = scmp.lt.s32.totalorder %s775_s10, %s1102_s1 }
  0x34   : > { %p783_p11 = scmp.lt.s32.totalorder %s781_s30, %s776_s24 }
  0x35   : > { %p779_p8 = pnand %p777_p5, %p748_p9 }
  0x36   : > { %p784_p0 = por %p783_p11, %p782_p13 }
  0x37   : > { %p780_p10 = pneg %p779_p8 }
  0x39   : > { %p785_p2 = pnand %p784_p0, %p780_p10 }
  0x3b   : > { %788 = shalt.err (!%p785_p2)
}
  0x3c   : > { %633 = dma.hbm_to_vmem [thread:$0]  (!%p999_p7), %s216_s3, 16, %s218_s12, %s208_s9  }
  0x3d   : > { %226 = sbr.rel (%p942_p3) target bundleno = 746 (0x2ea), region = 36  ;;  %s1037_s2 = sand.u32 (!%p942_p3), 1, %s874_s16  }
  0x3e   : > { %s563_s14 = sshll.u32 (!%p942_p3), %s1037_s2, 2  ;;  %s229_s6 = scalar_lea.sflag (!%p942_p3), [#allocation3], %s1037_s2 }
  0x3f   : > { %s232_s27 = scalar_lea.vmem (!%p942_p3), [#allocation2], %s563_s14 }
  0x42   : > { %849 = dma.done.wait (%p975_p12), %s229_s6, 64  }
  0x43   : > { %851 = vsyncadd (%p975_p12), %s229_s6, 4294967232  ;;  %s238_s3 = sand.u32 1, %s937_s22   ;;  %s241_s5 = scalar_lea.vmem [#allocation5], %s1037_s2 }
  0x44   : > { %s239_s23 = scalar_lea.sflag [#allocation6], %s238_s3 }
  0x45   : > { %853 = dma.done.wait (%p975_p12), %s239_s23, 16  }
  0x46   : > { %855 = vsyncadd (%p975_p12), %s239_s23, 4294967280 }
  0x47   : > { %857 = dma.done.wait (%p45_p1), [#allocation6], 768  }
  0x48   : > { %859 = vsyncadd (%p45_p1), [#allocation6], 4294966528 }
  0x49   : > { %861 = dma.done.wait (%p45_p1), [#allocation9], 48  }
  0x4a   : > { %863 = vsyncadd (%p45_p1), [#allocation9], 4294967248  ;;  %v581_v0 = vld [vmem:[#allocation7 + $0x18] sm:$0xf]  ;;  %v604_v1 = vld [vmem:[#allocation7 + $0x20] sm:$0xf0] }
  0x4b   : > { %v603_v2 = vld [vmem:[#allocation7 + $0x1c] sm:$0xf]  ;;  %v582_v3 = vor.u32 %v604_v1, %v581_v0  ;;  %v583_v4 = vld [vmem:[#allocation7 + $0x24] sm:$0xf0]  ;;  %v569_v5 = vld [vmem:[#allocation7] sm:$0xf] }
  0x4c   : > { %v601_v6 = vld [vmem:[#allocation7 + $0x8] sm:$0xf0]  ;;  %v586_v7 = vor.u32 %v603_v2, %v583_v4  ;;  %v600_v8 = vld [vmem:[#allocation7 + $0x4] sm:$0xf]  ;;  %v571_v9 = vld [vmem:[#allocation7 + $0xc] sm:$0xf0] }
  0x4d   : > { %341 = vmatpush.bf16.msra.mxu0 %v582_v3  ;;  %v570_v10 = vor.u32 %v601_v6, %v569_v5  ;;  %v574_v11 = vor.u32 %v600_v8, %v571_v9  ;;  %v282_v12 = vld [vmem:[%s232_s27] sm:$0xf]  ;;  %vm331_vm0 = vcmask 261120   ;;  %v291_v13 = vld [vmem:[#allocation8] sm:$0x7]  ;;  %vm395_vm1 = vcmask 64512  }
  0x4e   : > { %354 = vmatpush.bf16.msra.mxu1 %v586_v7  ;;  %v294_v14 = vperm.slane %v291_v13, 1  ;;  %v293_v16 = vperm.slane %v291_v13, 0  ;;  %v589_v24 = vld [vmem:[#allocation7 + $0x20] sm:$0xf]  ;;  %v605_v25 = vld [vmem:[#allocation7 + $0x28] sm:$0xf0] }
  0x4f   : > { %v577_v26 = vld [vmem:[#allocation7 + $0x8] sm:$0xf]  ;;  %v590_v27 = vor.u32 %v605_v25, %v589_v24  ;;  %v602_v28 = vld [vmem:[#allocation7 + $0x10] sm:$0xf0]  ;;  %v295_v38 = vperm.slane %v291_v13, 2  ;;  %vm412_vm2 = vcmask 1043456  }
  0x50   : > { %v578_v29 = vor.u32 %v602_v28, %v577_v26  ;;  %v376_v30 = vld [vmem:[%s241_s5] sm:$0x1]  ;;  %s597_s13 = sshll.u32 %s937_s22, 3  ;;  %s566_s28 = sshll.u32 %s1037_s2, 3  ;;  %vm429_vm3 = vcmask 130048  }
  0x51   : > { %342 = vmatpush.bf16.msra.mxu0 %v570_v10  ;;  %367 = vmatpush.bf16.msra.mxu2 %v590_v27  ;;  %v594_v31 = vadd.f32 -1.0, %v376_v30  ;;  %s442_s9 = scalar_lea.hbm %s1105_s4, %s597_s13  ;;  %s280_s10 = scalar_lea.vmem [#allocation10], %s566_s28 }
  0x52   : > { %355 = vmatpush.bf16.msra.mxu1 %v574_v11  ;;  %s444_s24 = sshll.u32 %s280_s10, 4  ;;  %s446_s25 = sshll.u32 %s442_s9, 4  ;;  %s445_s24 = int_to_ptr.vmem [resolvable:$true] %s444_s24  ;;  %s447_s25 = int_to_ptr.hbm [resolvable:$true] %s446_s25 }
  0x53   : > { %v378_v32 = vmul.f32 1e+09, %v594_v31  ;;  %s432_s29 = scalar_lea.sflag [#allocation4], %s1037_s2  ;;  %s818_s30 = sshra.s32 %s447_s25, 4  ;;  %s819_s30 = int_to_ptr.hbm [resolvable:$true] %s818_s30 }
  0x54   : > { %591 = vmatmul.msk.bf16.vlgmr.msra.gmra.mxu0 %vm331_vm0, %v282_v12  ;;  %s820_s7 = scalar_lea.hbm %s819_s30, 8  ;;  %s824_s14 = scalar_lea.hbm %s1105_s4, 16 }
  0x55   : > { %592 = vmatmul.msk.bf16.vlgmr.msra.gmra.mxu1 %vm331_vm0, %v282_v12  ;;  %368 = vmatpush.bf16.msra.mxu2 %v578_v29  ;;  %v380_v33 = vperm.slane %v378_v32, 0  ;;  %p821_p1 = scmp.ne.s32.totalorder %s819_s30, %s820_s7  ;;  %p825_p7 = scmp.lt.s32.totalorder %s819_s30, %s1105_s4 }
  0x56   : > { %p826_p9 = scmp.lt.s32.totalorder %s824_s14, %s820_s7 }
  0x57   : > { %p822_p3 = pnand %p821_p1, %p984_p4 }
  0x58   : > { %593 = vmatmul.msk.bf16.vlgmr.msra.gmra.mxu2 %vm331_vm0, %v282_v12  ;;  %p827_p5 = por %p826_p9, %p825_p7 }
  0x59   : > { %p823_p12 = pneg %p822_p3 }
  0x5b   : > { %p828_p8 = pnand %p827_p5, %p823_p12 }
  0xd1   : > { %v344_v15 = vpop.f32.mrf.mxu0 }
  0xd2   : > { %v357_v17 = vpop.f32.mrf.mxu1  ;;  %v345_v20 = vadd.f32 %v344_v15, %v293_v16 }
  0xd3   : > { %v358_v18 = vadd.f32 %v357_v17, %v294_v14 }
  0xd4   : > { %v374_v22 = vpack.c.bf16 %v345_v20, %v345_v20 }
  0xd5   : > { %v375_v19 = vpack.c.bf16 %v358_v18, %v358_v18 }
  0xd7   : > { %389 = vmatpush.bf16.xpose.msra.mxu3 %v375_v19 }
  0xd9   : > { %v346_v21 = vpop.f32.mrf.mxu0 }
  0xda   : > { %v359_v23 = vpop.f32.mrf.mxu1 }
  0xdb   : > { %v370_v39 = vpop.f32.mrf.mxu2 }
  0xdc   : > { %v371_v40 = vadd.f32 %v370_v39, %v295_v38 }
  0xde   : > { %390 = vmatmul.bf16.vlgmr.msra.gmra.mxu3 %v374_v22  ;;  %v408_v43 = vpack.c.bf16 %v371_v40, %v371_v40 }
  0xe0   : > { %v414_v45 = vsel %vm412_vm2, %v408_v43, 0 }
  0xe1   : > { %423 = vmatpush.bf16.msrb.mxu0 %v414_v45 }
  0xe3   : > { %v372_v46 = vpop.f32.mrf.mxu2 }
 0x161   : > { %v391_v34 = vpop.f32.mrf.mxu3 }
 0x162   : > { %v392_v35 = vadd.f32 %v391_v34, %v380_v33 }
 0x164   : > { %v396_v36 = vsel %vm395_vm1, %v392_v35, -inf }
 0x165   : > { %397 = vmax.xlane.f32.xlu0 %v396_v36 }
 0x169   : > { %v393_v37 = vpop.f32.mrf.mxu3 }
 0x1d8   : > { %v398_v41 = vpop.xlane.xlu0 %397 }
 0x1d9   : > { %v399_v42 = vsub.f32 %v392_v35, %v398_v41 }
 0x1db   : > { %v400_v44 = vmul.f32 1.442695, %v399_v42 }
 0x1dd   : > { %680 = vpow2.f32 %v400_v44 }
 0x1e3   : > { %v681_v47 = vpop.eup %680 }
 0x1e4   : > { %v402_v48 = vsel %vm395_vm1, %v681_v47, 0.0 }
 0x1e5   : > { %403 = vadd.xlane.f32.xlu0 %v402_v48 }
 0x258   : > { %v404_v49 = vpop.xlane.xlu0 %403 }
 0x259   : > { %682 = vrcp.f32 %v404_v49 }
 0x25f   : > { %v683_v50 = vpop.eup %682 }
 0x260   : > { %v406_v51 = vmul.f32 %v683_v50, %v681_v47 }
 0x262   : > { %v407_v52 = vpack.c.bf16 %v406_v51, %v406_v51 }
 0x264   : > { %595 = vmatmul.msk.bf16.vlgmr.msrb.gmra.mxu0 %vm395_vm1, %v407_v52 }
 0x2e1   : > { %v425_v53 = vpop.f32.mrf.mxu0 }
 0x2e2   : > { %430 = vst.msk [vmem:[%s280_s10] sm:$0xff] %vm429_vm3, %v425_v53 }
 0x2e3   : > { %831 = shalt.err (!%p828_p8)
}
 0x2e4   : > { %618 = dma.vmem_to_hbm [thread:$0]  (%p984_p4), %s445_s24, 128, %s447_s25, %s432_s29  }
 0x2e9   : > { %v427_v54 = vpop.f32.mrf.mxu0 }
 0x2ea PF: > { %s458_s2 = sand.u32 1, %s870_s15   ;;  %p1116_p10 = scmp.ge.s32.totalorder %s882_s18, 2 }
 0x2eb   : > { %s459_s3 = scalar_lea.sflag [#allocation4], %s458_s2 }
 0x2ec   : > { %p635_p13 = pnand %p1116_p10, %p988_p6 }
 0x2ee   : > { %p636_p11 = pneg %p635_p13 }
 0x2f0   : > { %865 = dma.done.wait (%p636_p11), %s459_s3, 128  }
 0x2f1   : > { %867 = vsyncadd (%p636_p11), %s459_s3, 4294967168  ;;  %p21_p0 = scmp.ge.s32.totalorder %s956_s8, 4   ;;  %s1117_s15 = smov %s874_s16 }
 0x2f2   : > { %s1118_s16 = smov %s878_s17  ;;  %s1119_s17 = smov %s967_s11 }
 0x2f3   : > { %s1120_s18 = smov %s956_s8  ;;  %23 = sbr.rel (!%p21_p0) target bundleno = 11 (0xb), region = 102 }
 0x2f8   :  { %465 = vsyncpa [#allocation3], 1 }
 0x2f9   :  { %467 = vsyncpa [#allocation3 + $0x1], 1 }
 0x2fa   :  { %468 = vsyncpa [#allocation6], 1 }
 0x2fb   :  { %470 = vsyncpa [#allocation6 + $0x1], 1 }
 0x2fc   :  { %471 = vsyncpa [#allocation9], 1 }
 0x2fd   :  { %472 = vsyncpa [#allocation4], 1 }
 0x2fe   :  { %474 = vsyncpa [#allocation4 + $0x1], 1 }

// kernel: tpu_custom_call.1
= control target key start
LH: loop header
LB: loop body
LE: loop exit
PB: predicated region body
PF: predicated region fallthrough
CT: control target
= control target key end

     0   :  { %s1101_s0 = inlined_call_operand.hbm [shape: bf16[2,8,32], index: 0, kind: input, shape index: {}]   ;;  %s1102_s1 = inlined_call_operand.hbm [shape: f32[2,1,8], index: 1, kind: input, shape index: {}]   ;;  %s1103_s2 = inlined_call_operand.hbm [shape: bf16[32,384], index: 2, kind: input, shape index: {}]   ;;  %s1104_s3 = inlined_call_operand.hbm [shape: f32[1,384], index: 3, kind: input, shape index: {}]   ;;  %s1105_s4 = inlined_call_operand.hbm [shape: f32[2,8,16], index: 4, kind: output, shape index: {}]  }
   0x1   :  { %1106 = sst [smem:[#allocation16_spill]] %s1103_s2 }
   0x2   :  { %1107 = sst [smem:[#allocation17_spill]] %s1104_s3 }
   0x3   :  { %9 = vsyncpa [#allocation3], 0 }
   0x4   :  { %11 = vsyncpa [#allocation3 + $0x1], 0 }
   0x5   :  { %12 = vsyncpa [#allocation6], 0 }
   0x6   :  { %14 = vsyncpa [#allocation6 + $0x1], 0 }
   0x7   :  { %15 = vsyncpa [#allocation9], 0 }
   0x8   :  { %16 = vsyncpa [#allocation4], 0 }
   0x9   :  { %18 = vsyncpa [#allocation4 + $0x1], 0  ;;  %s913_s15 = smov 0   ;;  %s915_s16 = smov 0  }
   0xa   :  { %s917_s17 = smov 0   ;;  %s919_s18 = smov 0  }
   0xb LB: > { %s1108_s2 = sld [smem:[#allocation16_spill]]  ;;  %s937_s22 = sadd.s32 4294967295, %s882_s18   ;;  %s882_s18 = sphi %s919_s18, %s1120_s18   ;;  %s878_s17 = sphi %s917_s17, %s1119_s17   ;;  %s874_s16 = sphi %s915_s16, %s1118_s16   ;;  %s870_s15 = sphi %s913_s15, %s1117_s15  }
   0xc   : > { %p556_p0 = scmp.ge.s32.totalorder %s882_s18, 1  ;;  %p45_p1 = scmp.eq.s32.totalorder %s937_s22, 0 }
   0xd   : > { %p149_p2 = scmp.lt.s32.totalorder %s882_s18, 3  ;;  %s884_s24 = smov [#allocation7]  }
   0xe   : > { %s162_s25 = sshll.u32 %s884_s24, 4  ;;  %s1110_s3 = sld [smem:[#allocation17_spill]]  ;;  %s163_s25 = int_to_ptr.vmem [resolvable:$true] %s162_s25 }
   0xf   : > { %p942_p3 = pnand %p556_p0, %p149_p2  ;;  %s885_s29 = smov [#allocation8]  }
  0x10   : > { %s177_s30 = sshll.u32 %s885_s29, 4  ;;  %s886_s5 = smov 192   ;;  %s178_s30 = int_to_ptr.vmem [resolvable:$true] %s177_s30 }
  0x11   : > { %s160_s21 = sshll.u32 %s1108_s2, 4  ;;  %p620_p4 = pneg %p942_p3  ;;  %s161_s21 = int_to_ptr.hbm [resolvable:$true] %s160_s21 }
  0x12   : > { %s887_s6 = smov 12   ;;  %s555_s7 = sadd.s32 4294967294, %s882_s18  }
  0x13   : > { %p621_p6 = pnand %p620_p4, %p45_p1  ;;  %s956_s8 = sadd.s32 1, %s882_s18  }
  0x14   : > { %s175_s28 = sshll.u32 %s1110_s3, 4  ;;  %s28_s9 = ssub.s32 %s882_s18, %s956_s8  ;;  %s176_s28 = int_to_ptr.hbm [resolvable:$true] %s175_s28 }
  0x15   : > { %623 = dma.hbm_to_vmem [thread:$0]  (!%p621_p6), %s161_s21, 768, %s163_s25, [#allocation6], %s886_s5, %s886_s5, %s887_s6  }
  0x16   : > { %626 = dma.hbm_to_vmem [thread:$0]  (!%p621_p6), %s176_s28, 48, %s178_s30, [#allocation9]  }
  0x17   : > { %s31_s10 = sadd.s32 1, %s878_s17  ;;  %p29_p7 = scmp.eq.s32.totalorder %s28_s9, 0 }
  0x18   : > { %p38_p8 = scmp.ne.s32.totalorder %s878_s17, %s874_s16  ;;  %p39_p9 = scmp.eq.s32.totalorder %s882_s18, 0 }
  0x19   : > { %p44_p10 = scmp.ne.s32.totalorder %s874_s16, %s870_s15  ;;  %p136_p13 = scmp.eq.s32.totalorder %s937_s22, 1 }
  0x1a   : > { %s967_s11 = scalar_select %p29_p7, %s878_s17, %s31_s10  }
  0x1b   : > { %p969_p11 = por %p39_p9, %p38_p8  ;;  %p975_p12 = por %p45_p1, %p44_p10 }
  0x1c   : > { %p142_p0 = scmp.eq.s32.totalorder %s555_s7, 1  ;;  %p640_p2 = scmp.lt.s32.totalorder %s882_s18, 2 }
  0x1d   : > { %s982_s14 = sand.u32 1, %s878_s17   ;;  %p984_p4 = por %p136_p13, %p38_p8 }
  0x1e   : > { %p988_p6 = por %p142_p0, %p44_p10  ;;  %s560_s21 = sshll.u32 %s982_s14, 2 }
  0x1f   : > { %s561_s24 = sshll.u32 %s882_s18, 2  ;;  %s192_s28 = scalar_lea.vmem [#allocation2], %s560_s21 }
  0x20   : > { %s196_s27 = scalar_lea.hbm %s1101_s0, %s561_s24  ;;  %s200_s29 = sshll.u32 %s192_s28, 4  ;;  %s201_s29 = int_to_ptr.vmem [resolvable:$true] %s200_s29 }
  0x21   : > { %s198_s30 = sshll.u32 %s196_s27, 4  ;;  %p999_p7 = pnand %p640_p2, %p969_p11  ;;  %s199_s30 = int_to_ptr.hbm [resolvable:$true] %s198_s30 }
  0x22   : > { %s207_s6 = sand.u32 1, %s882_s18   ;;  %s189_s7 = scalar_lea.sflag [#allocation3], %s982_s14 }
  0x23   : > { %s744_s9 = sshra.s32 %s199_s30, 4  ;;  %p748_p9 = pneg %p999_p7  ;;  %s745_s9 = int_to_ptr.hbm [resolvable:$true] %s744_s9 }
  0x24   : > { %s746_s10 = scalar_lea.hbm %s745_s9, 4  ;;  %s751_s24 = scalar_lea.hbm %s1101_s0, 8 }
  0x25   : > { %p747_p8 = scmp.ne.s32.totalorder %s745_s9, %s746_s10  ;;  %p752_p11 = scmp.lt.s32.totalorder %s745_s9, %s1101_s0 }
  0x26   : > { %p753_p0 = scmp.lt.s32.totalorder %s751_s24, %s746_s10 }
  0x27   : > { %p749_p10 = pnand %p748_p9, %p747_p8 }
  0x28   : > { %p754_p2 = por %p753_p0, %p752_p11 }
  0x29   : > { %p750_p13 = pneg %p749_p10 }
  0x2b   : > { %p755_p5 = pnand %p754_p2, %p750_p13 }
  0x2d   : > { %758 = shalt.err (!%p755_p5)
}
  0x2e   : > { %630 = dma.hbm_to_vmem [thread:$0]  (!%p999_p7), %s199_s30, 64, %s201_s29, %s189_s7  }
  0x2f   : > { %s213_s2 = scalar_lea.hbm %s1102_s1, %s882_s18  ;;  %s210_s21 = scalar_lea.vmem [#allocation5], %s982_s14 }
  0x30   : > { %s217_s12 = sshll.u32 %s210_s21, 4  ;;  %s215_s3 = sshll.u32 %s213_s2, 4  ;;  %s218_s12 = int_to_ptr.vmem [resolvable:$true] %s217_s12  ;;  %s216_s3 = int_to_ptr.hbm [resolvable:$true] %s215_s3 }
  0x31   : > { %s208_s9 = scalar_lea.sflag [#allocation6], %s207_s6  ;;  %s774_s10 = sshra.s32 %s216_s3, 4  ;;  %s775_s10 = int_to_ptr.hbm [resolvable:$true] %s774_s10 }
  0x32   : > { %s776_s24 = scalar_lea.hbm %s775_s10, 1  ;;  %s781_s30 = scalar_lea.hbm %s1102_s1, 2 }
  0x33   : > { %p777_p5 = scmp.ne.s32.totalorder %s775_s10, %s776_s24  ;;  %p782_p13 = scmp.lt.s32.totalorder %s775_s10, %s1102_s1 }
  0x34   : > { %p783_p11 = scmp.lt.s32.totalorder %s781_s30, %s776_s24 }
  0x35   : > { %p779_p8 = pnand %p777_p5, %p748_p9 }
  0x36   : > { %p784_p0 = por %p783_p11, %p782_p13 }
  0x37   : > { %p780_p10 = pneg %p779_p8 }
  0x39   : > { %p785_p2 = pnand %p784_p0, %p780_p10 }
  0x3b   : > { %788 = shalt.err (!%p785_p2)
}
  0x3c   : > { %633 = dma.hbm_to_vmem [thread:$0]  (!%p999_p7), %s216_s3, 16, %s218_s12, %s208_s9  }
  0x3d   : > { %226 = sbr.rel (%p942_p3) target bundleno = 746 (0x2ea), region = 36  ;;  %s1037_s2 = sand.u32 (!%p942_p3), 1, %s874_s16  }
  0x3e   : > { %s563_s14 = sshll.u32 (!%p942_p3), %s1037_s2, 2  ;;  %s229_s6 = scalar_lea.sflag (!%p942_p3), [#allocation3], %s1037_s2 }
  0x3f   : > { %s232_s27 = scalar_lea.vmem (!%p942_p3), [#allocation2], %s563_s14 }
  0x42   : > { %849 = dma.done.wait (%p975_p12), %s229_s6, 64  }
  0x43   : > { %851 = vsyncadd (%p975_p12), %s229_s6, 4294967232  ;;  %s238_s3 = sand.u32 1, %s937_s22   ;;  %s241_s5 = scalar_lea.vmem [#allocation5], %s1037_s2 }
  0x44   : > { %s239_s23 = scalar_lea.sflag [#allocation6], %s238_s3 }
  0x45   : > { %853 = dma.done.wait (%p975_p12), %s239_s23, 16  }
  0x46   : > { %855 = vsyncadd (%p975_p12), %s239_s23, 4294967280 }
  0x47   : > { %857 = dma.done.wait (%p45_p1), [#allocation6], 768  }
  0x48   : > { %859 = vsyncadd (%p45_p1), [#allocation6], 4294966528 }
  0x49   : > { %861 = dma.done.wait (%p45_p1), [#allocation9], 48  }
  0x4a   : > { %863 = vsyncadd (%p45_p1), [#allocation9], 4294967248  ;;  %v581_v0 = vld [vmem:[#allocation7 + $0x18] sm:$0xf]  ;;  %v604_v1 = vld [vmem:[#allocation7 + $0x20] sm:$0xf0] }
  0x4b   : > { %v603_v2 = vld [vmem:[#allocation7 + $0x1c] sm:$0xf]  ;;  %v582_v3 = vor.u32 %v604_v1, %v581_v0  ;;  %v583_v4 = vld [vmem:[#allocation7 + $0x24] sm:$0xf0]  ;;  %v569_v5 = vld [vmem:[#allocation7] sm:$0xf] }
  0x4c   : > { %v601_v6 = vld [vmem:[#allocation7 + $0x8] sm:$0xf0]  ;;  %v586_v7 = vor.u32 %v603_v2, %v583_v4  ;;  %v600_v8 = vld [vmem:[#allocation7 + $0x4] sm:$0xf]  ;;  %v571_v9 = vld [vmem:[#allocation7 + $0xc] sm:$0xf0] }
  0x4d   : > { %341 = vmatpush.bf16.msra.mxu0 %v582_v3  ;;  %v570_v10 = vor.u32 %v601_v6, %v569_v5  ;;  %v574_v11 = vor.u32 %v600_v8, %v571_v9  ;;  %v282_v12 = vld [vmem:[%s232_s27] sm:$0xf]  ;;  %vm331_vm0 = vcmask 261120   ;;  %v291_v13 = vld [vmem:[#allocation8] sm:$0x7]  ;;  %vm395_vm1 = vcmask 64512  }
  0x4e   : > { %354 = vmatpush.bf16.msra.mxu1 %v586_v7  ;;  %v294_v14 = vperm.slane %v291_v13, 1  ;;  %v293_v16 = vperm.slane %v291_v13, 0  ;;  %v589_v24 = vld [vmem:[#allocation7 + $0x20] sm:$0xf]  ;;  %v605_v25 = vld [vmem:[#allocation7 + $0x28] sm:$0xf0] }
  0x4f   : > { %v577_v26 = vld [vmem:[#allocation7 + $0x8] sm:$0xf]  ;;  %v590_v27 = vor.u32 %v605_v25, %v589_v24  ;;  %v602_v28 = vld [vmem:[#allocation7 + $0x10] sm:$0xf0]  ;;  %v295_v38 = vperm.slane %v291_v13, 2  ;;  %vm412_vm2 = vcmask 1043456  }
  0x50   : > { %v578_v29 = vor.u32 %v602_v28, %v577_v26  ;;  %v376_v30 = vld [vmem:[%s241_s5] sm:$0x1]  ;;  %s597_s13 = sshll.u32 %s937_s22, 3  ;;  %s566_s28 = sshll.u32 %s1037_s2, 3  ;;  %vm429_vm3 = vcmask 130048  }
  0x51   : > { %342 = vmatpush.bf16.msra.mxu0 %v570_v10  ;;  %367 = vmatpush.bf16.msra.mxu2 %v590_v27  ;;  %v594_v31 = vadd.f32 -1.0, %v376_v30  ;;  %s442_s9 = scalar_lea.hbm %s1105_s4, %s597_s13  ;;  %s280_s10 = scalar_lea.vmem [#allocation10], %s566_s28 }
  0x52   : > { %355 = vmatpush.bf16.msra.mxu1 %v574_v11  ;;  %s444_s24 = sshll.u32 %s280_s10, 4  ;;  %s446_s25 = sshll.u32 %s442_s9, 4  ;;  %s445_s24 = int_to_ptr.vmem [resolvable:$true] %s444_s24  ;;  %s447_s25 = int_to_ptr.hbm [resolvable:$true] %s446_s25 }
  0x53   : > { %v378_v32 = vmul.f32 1e+09, %v594_v31  ;;  %s432_s29 = scalar_lea.sflag [#allocation4], %s1037_s2  ;;  %s818_s30 = sshra.s32 %s447_s25, 4  ;;  %s819_s30 = int_to_ptr.hbm [resolvable:$true] %s818_s30 }
  0x54   : > { %591 = vmatmul.msk.bf16.vlgmr.msra.gmra.mxu0 %vm331_vm0, %v282_v12  ;;  %s820_s7 = scalar_lea.hbm %s819_s30, 8  ;;  %s824_s14 = scalar_lea.hbm %s1105_s4, 16 }
  0x55   : > { %592 = vmatmul.msk.bf16.vlgmr.msra.gmra.mxu1 %vm331_vm0, %v282_v12  ;;  %368 = vmatpush.bf16.msra.mxu2 %v578_v29  ;;  %v380_v33 = vperm.slane %v378_v32, 0  ;;  %p821_p1 = scmp.ne.s32.totalorder %s819_s30, %s820_s7  ;;  %p825_p7 = scmp.lt.s32.totalorder %s819_s30, %s1105_s4 }
  0x56   : > { %p826_p9 = scmp.lt.s32.totalorder %s824_s14, %s820_s7 }
  0x57   : > { %p822_p3 = pnand %p821_p1, %p984_p4 }
  0x58   : > { %593 = vmatmul.msk.bf16.vlgmr.msra.gmra.mxu2 %vm331_vm0, %v282_v12  ;;  %p827_p5 = por %p826_p9, %p825_p7 }
  0x59   : > { %p823_p12 = pneg %p822_p3 }
  0x5b   : > { %p828_p8 = pnand %p827_p5, %p823_p12 }
  0xd1   : > { %v344_v15 = vpop.f32.mrf.mxu0 }
  0xd2   : > { %v357_v17 = vpop.f32.mrf.mxu1  ;;  %v345_v20 = vadd.f32 %v344_v15, %v293_v16 }
  0xd3   : > { %v358_v18 = vadd.f32 %v357_v17, %v294_v14 }
  0xd4   : > { %v374_v22 = vpack.c.bf16 %v345_v20, %v345_v20 }
  0xd5   : > { %v375_v19 = vpack.c.bf16 %v358_v18, %v358_v18 }
  0xd7   : > { %389 = vmatpush.bf16.xpose.msra.mxu3 %v375_v19 }
  0xd9   : > { %v346_v21 = vpop.f32.mrf.mxu0 }
  0xda   : > { %v359_v23 = vpop.f32.mrf.mxu1 }
  0xdb   : > { %v370_v39 = vpop.f32.mrf.mxu2 }
  0xdc   : > { %v371_v40 = vadd.f32 %v370_v39, %v295_v38 }
  0xde   : > { %390 = vmatmul.bf16.vlgmr.msra.gmra.mxu3 %v374_v22  ;;  %v408_v43 = vpack.c.bf16 %v371_v40, %v371_v40 }
  0xe0   : > { %v414_v45 = vsel %vm412_vm2, %v408_v43, 0 }
  0xe1   : > { %423 = vmatpush.bf16.msrb.mxu0 %v414_v45 }
  0xe3   : > { %v372_v46 = vpop.f32.mrf.mxu2 }
 0x161   : > { %v391_v34 = vpop.f32.mrf.mxu3 }
 0x162   : > { %v392_v35 = vadd.f32 %v391_v34, %v380_v33 }
 0x164   : > { %v396_v36 = vsel %vm395_vm1, %v392_v35, -inf }
 0x165   : > { %397 = vmax.xlane.f32.xlu0 %v396_v36 }
 0x169   : > { %v393_v37 = vpop.f32.mrf.mxu3 }
 0x1d8   : > { %v398_v41 = vpop.xlane.xlu0 %397 }
 0x1d9   : > { %v399_v42 = vsub.f32 %v392_v35, %v398_v41 }
 0x1db   : > { %v400_v44 = vmul.f32 1.442695, %v399_v42 }
 0x1dd   : > { %680 = vpow2.f32 %v400_v44 }
 0x1e3   : > { %v681_v47 = vpop.eup %680 }
 0x1e4   : > { %v402_v48 = vsel %vm395_vm1, %v681_v47, 0.0 }
 0x1e5   : > { %403 = vadd.xlane.f32.xlu0 %v402_v48 }
 0x258   : > { %v404_v49 = vpop.xlane.xlu0 %403 }
 0x259   : > { %682 = vrcp.f32 %v404_v49 }
 0x25f   : > { %v683_v50 = vpop.eup %682 }
 0x260   : > { %v406_v51 = vmul.f32 %v683_v50, %v681_v47 }
 0x262   : > { %v407_v52 = vpack.c.bf16 %v406_v51, %v406_v51 }
 0x264   : > { %595 = vmatmul.msk.bf16.vlgmr.msrb.gmra.mxu0 %vm395_vm1, %v407_v52 }
 0x2e1   : > { %v425_v53 = vpop.f32.mrf.mxu0 }
 0x2e2   : > { %430 = vst.msk [vmem:[%s280_s10] sm:$0xff] %vm429_vm3, %v425_v53 }
 0x2e3   : > { %831 = shalt.err (!%p828_p8)
}
 0x2e4   : > { %618 = dma.vmem_to_hbm [thread:$0]  (%p984_p4), %s445_s24, 128, %s447_s25, %s432_s29  }
 0x2e9   : > { %v427_v54 = vpop.f32.mrf.mxu0 }
 0x2ea PF: > { %s458_s2 = sand.u32 1, %s870_s15   ;;  %p1116_p10 = scmp.ge.s32.totalorder %s882_s18, 2 }
 0x2eb   : > { %s459_s3 = scalar_lea.sflag [#allocation4], %s458_s2 }
 0x2ec   : > { %p635_p13 = pnand %p1116_p10, %p988_p6 }
 0x2ee   : > { %p636_p11 = pneg %p635_p13 }
 0x2f0   : > { %865 = dma.done.wait (%p636_p11), %s459_s3, 128  }
 0x2f1   : > { %867 = vsyncadd (%p636_p11), %s459_s3, 4294967168  ;;  %p21_p0 = scmp.ge.s32.totalorder %s956_s8, 4   ;;  %s1117_s15 = smov %s874_s16 }
 0x2f2   : > { %s1118_s16 = smov %s878_s17  ;;  %s1119_s17 = smov %s967_s11 }
 0x2f3   : > { %s1120_s18 = smov %s956_s8  ;;  %23 = sbr.rel (!%p21_p0) target bundleno = 11 (0xb), region = 102 }
 0x2f8   :  { %465 = vsyncpa [#allocation3], 1 }
 0x2f9   :  { %467 = vsyncpa [#allocation3 + $0x1], 1 }
 0x2fa   :  { %468 = vsyncpa [#allocation6], 1 }
 0x2fb   :  { %470 = vsyncpa [#allocation6 + $0x1], 1 }
 0x2fc   :  { %471 = vsyncpa [#allocation9], 1 }
 0x2fd   :  { %472 = vsyncpa [#allocation4], 1 }
 0x2fe   :  { %474 = vsyncpa [#allocation4 + $0x1], 1 }

</bundles_post_ra>
